<compile_context>
chip_gen: v5e
topology: v5e:2x2
jax: 0.10.0
libtpu: 0.0.40
codegen_flags: <defaults>
</compile_context>

<pallas_src>
import jax
import jax.numpy as jnp
from jax.experimental import pallas as pl
from jax.experimental.pallas import tpu as pltpu


# ------------------------------- kernel ------------------------------------ #

def _make_patch_embed_kernel(tm, rbp, slice_pos):
    """o = x @ w + pos_bias, one (TM, TN) output tile per grid step."""

    def kernel(x_ref, w_ref, pb_ref, o_ref):
        # x_ref:  (TM, K)         flattened-patch tile (f32 or bf16)
        # w_ref:  (K, TN)         projection-weight tile (same dtype as x)
        # pb_ref: (POS_ROWS, TN)  position embedding + folded bias (f32)
        # o_ref:  (TM, TN)
        y = jnp.dot(x_ref[...], w_ref[...], preferred_element_type=jnp.float32)
        if slice_pos:
            # Full-height VMEM-resident pos block: take this row-tile's slice.
            start = pl.multiple_of((pl.program_id(1) % rbp) * tm, tm)
            pb = pb_ref[pl.ds(start, tm), :]
        else:
            pb = pb_ref[...]
        o_ref[...] = (y + pb).astype(o_ref.dtype)

    return kernel


# --------------------------- tiling helpers -------------------------------- #

def _round_up(v, m):
    return ((v + m - 1) // m) * m


def _col_tile_candidates(e_pad):
    """Multiples of 128 dividing e_pad, descending (e_pad itself first)."""
    cands = []
    t = e_pad
    while t >= 128:
        if e_pad % t == 0:
            cands.append(t)
        t -= 128
    return cands or [e_pad]


def _pick_row_tile(n_pad, b, target, align):
    """Row tile for the flattened (B*n_pad, K) patch matrix.

    Returns (tm, rbp, reps): rbp = row-blocks per image (tm divides n_pad);
    reps = whole images spanned by one row tile (only when rbp == 1)."""
    if n_pad > target:
        tm = align
        start = target - target % align
        for t in range(start, 0, -align):
            if n_pad % t == 0:
                tm = t
                break
        return tm, n_pad // tm, 1
    reps = 1
    for r in range(min(b, max(1, target // n_pad)), 0, -1):
        if b % r == 0:
            reps = r
            break
    return n_pad * reps, 1, reps


def _ws_bytes(tm, tn, k_pad, pos_rows, in_bpe, out_bpe):
    """Double-buffered VMEM working set of one grid step."""
    return 2 * (tm * k_pad * in_bpe        # patches tile
                + k_pad * tn * in_bpe      # weight tile
                + pos_rows * tn * 4        # pos(+bias) tile, f32
                + tm * tn * out_bpe)       # output tile


def _vmem_budget():
    try:
        cap = int(pltpu.get_tpu_info().vmem_capacity_bytes)
    except Exception:
        cap = 64 * 1024 * 1024  # conservative default = v7x physical VMEM
    if cap <= 0:
        cap = 64 * 1024 * 1024
    return min(cap // 2, 64 * 1024 * 1024), cap


_ROW_TARGETS = (1024, 768, 512, 384, 256, 192, 128, 96, 64, 48, 32, 16, 8)
_STEP_COST_BYTES = 400_000  # ~0.35us per grid step expressed as HBM bytes @ ~1.1 TB/s


def _select_config(n_pad, b, k_pad, e_pad, row_align, in_bpe, out_bpe, budget):
    """Pick (tm, tn, rbp, reps, pos_rows) minimizing approximate HBM traffic
    plus grid-step overhead, under the double-buffered VMEM budget."""
    bn_pad = b * n_pad
    best = None
    for tn in _col_tile_candidates(e_pad):
        col_tiles = e_pad // tn
        seen = set()
        for target in _ROW_TARGETS:
            if target % row_align:
                continue
            tm, rbp, reps = _pick_row_tile(n_pad, b, target, row_align)
            if tm in seen:
                continue
            seen.add(tm)
            steps = (bn_pad // tm) * col_tiles
            pos_opts = (max(tm, n_pad), tm) if rbp > 1 else (tm,)
            for pos_rows in pos_opts:
                ws = _ws_bytes(tm, tn, k_pad, pos_rows, in_bpe, out_bpe)
                if ws > budget:
                    continue
                pos_resident = (rbp == 1) or (pos_rows == n_pad)
                traffic = (col_tiles * bn_pad * k_pad * in_bpe        # patch reads
                           + e_pad * k_pad * in_bpe                   # weight reads
                           + (pos_rows * e_pad * 4 if pos_resident
                              else bn_pad * e_pad * 4)                # pos reads
                           + bn_pad * e_pad * out_bpe)                # output writes
                score = traffic + steps * _STEP_COST_BYTES
                if best is None or score < best["score"]:
                    best = dict(tm=tm, tn=tn, rbp=rbp, reps=reps,
                                pos_rows=pos_rows, ws=ws, score=score)
    return best


# ------------------------------- wrapper ------------------------------------ #

def patch_embedding_forward(x, params, patch_size, *, use_bf16=True, out_dtype=None):
    """ViT patch embedding forward: (B, C, H, W) -> (B, 1 + N, E)."""
    w_t = params["proj_w_t"]          # (K, E) = Linear.weight.T
    bias = params["proj_b"]           # (E,)
    cls_token = params["cls_token"]   # (1, 1, E)
    pos_emb = params["pos_emb"]       # (N + 1, E)

    b, c, h, w = x.shape
    p = patch_size
    nh, nw = h // p, w // p
    n = nh * nw
    k = p * p * c
    e = w_t.shape[1]
    out_dtype = x.dtype if out_dtype is None else jnp.dtype(out_dtype)

    compute_dtype = jnp.bfloat16 if use_bf16 else x.dtype
    in_bpe = jnp.dtype(compute_dtype).itemsize
    out_bpe = jnp.dtype(out_dtype).itemsize
    # bf16 packs 16 rows per vreg: keep row tiles 16-aligned in that case.
    row_align = 16 if in_bpe == 2 else 8

    n_pad = _round_up(n, row_align)
    e_pad = _round_up(e, 128)
    # Pad K to a multiple of 128 only when the extra traffic is small (<=12.5%).
    k128 = _round_up(k, 128)
    k_pad = k128 if (k128 - k) * 8 <= k else _round_up(k, row_align)

    # --- glue: extract patches (torch permute(0,2,4,3,5,1)); cast to the compute
    #     dtype BEFORE the transpose so the materialized intermediate is half-size.
    # TODO(synk): allow_input_fusion / an index_map-level (h/p, w/p) gather could
    # remove this extra HBM round-trip entirely; kept as plain XLA for robustness.
    patches = x.astype(compute_dtype).reshape(b, c, nh, p, nw, p)
    patches = jnp.transpose(patches, (0, 2, 4, 3, 5, 1)).reshape(b, n, k)
    patches = jnp.pad(patches, ((0, 0), (0, n_pad - n), (0, k_pad - k)))
    patches_flat = patches.reshape(b * n_pad, k_pad)

    w_op = jnp.pad(w_t, ((0, k_pad - k), (0, e_pad - e))).astype(compute_dtype)

    # Fold the Linear bias into the patch-token position embeddings (one operand,
    # one VPU add in the kernel; cls row gets no projection bias — see below).
    pos_bias = (pos_emb[1:] + bias[None, :]).astype(jnp.float32)
    pos_bias = jnp.pad(pos_bias, ((0, n_pad - n), (0, e_pad - e)))

    budget, vmem_cap = _vmem_budget()
    cfg = _select_config(n_pad, b, k_pad, e_pad, row_align, in_bpe, out_bpe, budget)
    if cfg is None:  # pathological shapes: ignore the budget rather than fail
        cfg = _select_config(n_pad, b, k_pad, e_pad, row_align, in_bpe, out_bpe,
                             float("inf"))
    tm, tn, rbp, reps, pos_rows = (cfg["tm"], cfg["tn"], cfg["rbp"],
                                   cfg["reps"], cfg["pos_rows"])

    if reps > 1:
        # One row tile spans `reps` whole images; replicate pos so rows line up.
        pos_op = jnp.tile(pos_bias, (reps, 1))          # (tm, e_pad)
    else:
        pos_op = pos_bias                               # (n_pad, e_pad)

    slice_pos = (rbp > 1) and (pos_rows == n_pad)       # full-height resident pos
    if rbp > 1 and pos_rows == tm:
        pos_index = lambda j, i: (i % rbp, j)           # streamed per row tile
    else:
        pos_index = lambda j, i: (0, j)                 # VMEM-resident

    bn_pad = b * n_pad
    row_tiles = bn_pad // tm
    col_tiles = e_pad // tn
    # If E must be split, keep the column axis sequential so megacore (v7x)
    # shards the row axis only (no redundant patch streaming per core).
    col_sem = "parallel" if col_tiles == 1 else "arbitrary"

    vmem_limit = int(min(max(cfg["ws"] * 5 // 4 + (4 << 20), 32 << 20),
                         vmem_cap * 3 // 4))

    out_flat = pl.pallas_call(
        _make_patch_embed_kernel(tm, rbp, slice_pos),
        out_shape=jax.ShapeDtypeStruct((bn_pad, e_pad), out_dtype),
        # Column (E) tile outer, row (token) tile inner: the weight block index
        # is constant across the inner sweep and is fetched once per column tile.
        grid=(col_tiles, row_tiles),
        in_specs=[
            pl.BlockSpec((tm, k_pad), lambda j, i: (i, 0)),       # patches
            pl.BlockSpec((k_pad, tn), lambda j, i: (0, j)),       # weight
            pl.BlockSpec((pos_rows, tn), pos_index),              # pos + bias
        ],
        out_specs=pl.BlockSpec((tm, tn), lambda j, i: (i, j)),
        compiler_params=pltpu.CompilerParams(
            dimension_semantics=(col_sem, "parallel"),
            vmem_limit_bytes=vmem_limit,
        ),
    )(patches_flat, w_op, pos_op)

    out_patches = out_flat.reshape(b, n_pad, e_pad)[:, :n, :e]

    # cls token row (tiny; plain JAX, no projection bias per the reference).
    cls_row = (jnp.broadcast_to(cls_token, (b, 1, e))
               + pos_emb[0].reshape(1, 1, e)).astype(out_dtype)
    return jnp.concatenate([cls_row, out_patches], axis=1)


# ------------------------ params / reference ------------------------------- #

def init_params(key, in_channels, patch_size, emb_size, img_h, img_w):
    k = patch_size * patch_size * in_channels
    n_tokens = (img_h // patch_size) * (img_w // patch_size) + 1
    k1, k2, k3, k4 = jax.random.split(key, 4)
    bound = 1.0 / jnp.sqrt(k)
    proj_w = jax.random.uniform(k1, (emb_size, k), jnp.float32, -bound, bound)
    proj_b = jax.random.uniform(k2, (emb_size,), jnp.float32, -bound, bound)
    cls_token = jax.random.normal(k3, (1, 1, emb_size), jnp.float32)
    pos_emb = jax.random.normal(k4, (n_tokens, emb_size), jnp.float32)
    return {
        "proj_w_t": proj_w.T,
        "proj_b": proj_b,
        "cls_token": cls_token,
        "pos_emb": pos_emb,
    }


def _reference_forward(x, params, patch_size):
    b, c, h, w = x.shape
    p = patch_size
    patches = x.reshape(b, c, h // p, p, w // p, p)
    patches = jnp.transpose(patches, (0, 2, 4, 3, 5, 1)).reshape(b, -1, p * p * c)
    y = patches @ params["proj_w_t"] + params["proj_b"]
    cls = jnp.broadcast_to(params["cls_token"], (b, 1, y.shape[-1]))
    y = jnp.concatenate([cls, y], axis=1)
    return y + params["pos_emb"][None, :, :]


if __name__ == "__main__":
    key = jax.random.PRNGKey(0)

    # --- case 1: small shapes (B=2, C=4, H=W=16, patch=4, emb=32) ---
    B, C, H, W, PATCH, EMB = 2, 4, 16, 16, 4, 32
    kx, kp, key = jax.random.split(key, 3)
    x = jax.random.normal(kx, (B, C, H, W), jnp.float32)
    params = init_params(kp, C, PATCH, EMB, H, W)
    ref = _reference_forward(x, params, PATCH)
    n_tokens = (H // PATCH) * (W // PATCH) + 1

    # f32 path — tight check against the reference.
    fwd_f32 = jax.jit(lambda xx: patch_embedding_forward(xx, params, PATCH,
                                                         use_bf16=False))
    out = jax.block_until_ready(fwd_f32(x))
    assert out.shape == (B, n_tokens, EMB)
    assert jnp.allclose(out, ref, atol=1e-4, rtol=1e-4)

    # bf16 fast path (f32 accumulation) — looser tolerance.
    fwd_bf16 = jax.jit(lambda xx: patch_embedding_forward(xx, params, PATCH,
                                                          use_bf16=True))
    out_bf = jax.block_until_ready(fwd_bf16(x))
    assert out_bf.shape == (B, n_tokens, EMB)
    assert jnp.allclose(out_bf, ref, atol=5e-2, rtol=5e-2)

    # --- case 2: larger image so n_pad > TM (exercises the rbp>1 resident-pos
    #     in-kernel pl.ds slice path); still small overall (B=1, C=3, 128x128, p=2).
    B2, C2, H2, W2, P2, E2 = 1, 3, 128, 128, 2, 32
    kx2, kp2, key = jax.random.split(key, 3)
    x2 = jax.random.normal(kx2, (B2, C2, H2, W2), jnp.float32)
    params2 = init_params(kp2, C2, P2, E2, H2, W2)
    ref2 = _reference_forward(x2, params2, P2)
    n_tokens2 = (H2 // P2) * (W2 // P2) + 1
    fwd2 = jax.jit(lambda xx: patch_embedding_forward(xx, params2, P2,
                                                      use_bf16=False))
    out2 = jax.block_until_ready(fwd2(x2))
    assert out2.shape == (B2, n_tokens2, E2)
    assert jnp.allclose(out2, ref2, atol=1e-3, rtol=1e-3)

    print("KERNEL_OK")
</pallas_src>

<mosaic_0001>
module attributes {stable_mosaic.version = 11 : i64} {
  func.func @kernel(%arg0: i32, %arg1: i32, %arg2: memref<32x64xf32, #tpu.memory_space<vmem>>, %arg3: memref<64x128xf32, #tpu.memory_space<vmem>>, %arg4: memref<32x128xf32, #tpu.memory_space<vmem>>, %arg5: memref<32x128xf32, #tpu.memory_space<vmem>>) attributes {dimension_semantics = [#tpu.dimension_semantics<parallel>, #tpu.dimension_semantics<parallel>], iteration_bounds = array<i64: 1, 1>, scalar_prefetch = 0 : i64, scratch_operands = 0 : i64, tpu.core_type = #tpu.core_type<tc>, window_params = [{transform_indices = @transform_0, window_bounds = array<i64: 32, 64>}, {transform_indices = @transform_1, window_bounds = array<i64: 64, 128>}, {transform_indices = @transform_2, window_bounds = array<i64: 32, 128>}, {transform_indices = @transform_3, window_bounds = array<i64: 32, 128>}]} {
    %c0 = arith.constant 0 : index
    %c0_0 = arith.constant 0 : index
    %0 = vector.load %arg2[%c0, %c0_0] : memref<32x64xf32, #tpu.memory_space<vmem>>, vector<32x64xf32>
    %c0_1 = arith.constant 0 : index
    %c0_2 = arith.constant 0 : index
    %1 = vector.load %arg3[%c0_1, %c0_2] : memref<64x128xf32, #tpu.memory_space<vmem>>, vector<64x128xf32>
    %cst = arith.constant dense<0.000000e+00> : vector<32x128xf32>
    %2 = tpu.matmul %0, %1, %cst {dimension_numbers = #tpu.dot_dimension_numbers<[1], [0], [0], [1], [0, 0, 1, 1], [], []>} : vector<32x64xf32>, vector<64x128xf32>, vector<32x128xf32> -> vector<32x128xf32>
    %c0_3 = arith.constant 0 : index
    %c0_4 = arith.constant 0 : index
    %3 = vector.load %arg4[%c0_3, %c0_4] : memref<32x128xf32, #tpu.memory_space<vmem>>, vector<32x128xf32>
    %4 = arith.addf %2, %3 : vector<32x128xf32>
    %c0_5 = arith.constant 0 : index
    %c0_6 = arith.constant 0 : index
    %5 = vector.load %arg5[%c0_5, %c0_6] : memref<32x128xf32, #tpu.memory_space<vmem>>, vector<32x128xf32>
    tpu.vector_store %arg5[%c0_5, %c0_6], %4 {strides = array<i32>} : memref<32x128xf32, #tpu.memory_space<vmem>>, vector<32x128xf32>,
    return
  }
  func.func @transform_0(%arg0: i32, %arg1: i32) -> (i32, i32) {
    %c0_i32 = arith.constant 0 : i32
    %c0_i32_0 = arith.constant 0 : i32
    return %arg1, %c0_i32 : i32, i32
  }
  func.func @transform_1(%arg0: i32, %arg1: i32) -> (i32, i32) {
    %c0_i32 = arith.constant 0 : i32
    %c0_i32_0 = arith.constant 0 : i32
    return %c0_i32, %arg0 : i32, i32
  }
  func.func @transform_2(%arg0: i32, %arg1: i32) -> (i32, i32) {
    %c0_i32 = arith.constant 0 : i32
    %c0_i32_0 = arith.constant 0 : i32
    return %c0_i32, %arg0 : i32, i32
  }
  func.func @transform_3(%arg0: i32, %arg1: i32) -> (i32, i32) {
    %c0_i32 = arith.constant 0 : i32
    return %arg1, %arg0 : i32, i32
  }
}

</mosaic_0001>

<bundles_post_ra>
// kernel: _lambda_.1
= control target key start
LH: loop header
LB: loop body
LE: loop exit
PB: predicated region body
PF: predicated region fallthrough
CT: control target
= control target key end

     0   :  { %vm30_vm0 = vcmask 523264   ;;  %s188_s1 = inlined_call_operand.vmem [shape: f32[64,128], index: 1, kind: input, shape index: {}]   ;;  %s189_s0 = inlined_call_operand.vmem [shape: f32[32,64], index: 0, kind: input, shape index: {}]   ;;  %s190_s2 = inlined_call_operand.vmem [shape: f32[32,128], index: 2, kind: input, shape index: {}]   ;;  %s191_s3 = inlined_call_operand.vmem [shape: f32[32,128], index: 3, kind: output, shape index: {}]  }
   0x1   :  { %v25_v0 = vld [vmem:[%s188_s1 + $0x38] sm:$0xff]  ;;  %v24_v1 = vld [vmem:[%s188_s1 + $0x30] sm:$0xff]  ;;  %v23_v2 = vld [vmem:[%s188_s1 + $0x28] sm:$0xff] }
   0x2   :  { %85 = vmatpush.msra.mxu2 %v25_v0  ;;  %86 = vmatpush.msra.mxu3 %v25_v0  ;;  %v22_v3 = vld [vmem:[%s188_s1 + $0x20] sm:$0xff]  ;;  %v21_v4 = vld [vmem:[%s188_s1 + $0x18] sm:$0xff]  ;;  %v20_v5 = vld [vmem:[%s188_s1 + $0x10] sm:$0xff] }
   0x3   :  { %51 = vmatpush.msra.mxu0 %v25_v0  ;;  %84 = vmatpush.msra.mxu1 %v25_v0  ;;  %v19_v6 = vld [vmem:[%s188_s1 + $0x8] sm:$0xff]  ;;  %v18_v7 = vld [vmem:[%s188_s1] sm:$0xff]  ;;  %v16_v8 = vld [vmem:[%s189_s0 + $0x10] sm:$0xff] }
   0x4   :  { %88 = vmatpush.msra.mxu2 %v24_v1  ;;  %89 = vmatpush.msra.mxu3 %v24_v1  ;;  %v17_v9 = vld [vmem:[%s189_s0 + $0x18] sm:$0xff]  ;;  %v14_v10 = vld [vmem:[%s189_s0] sm:$0xff]  ;;  %v15_v11 = vld [vmem:[%s189_s0 + $0x8] sm:$0xff] }
   0x5   :  { %52 = vmatpush.msra.mxu0 %v24_v1  ;;  %87 = vmatpush.msra.mxu1 %v24_v1  ;;  %v26_v12 = vld [vmem:[%s190_s2] sm:$0xff]  ;;  %v27_v13 = vld [vmem:[%s190_s2 + $0x8] sm:$0xff]  ;;  %v28_v18 = vld [vmem:[%s190_s2 + $0x10] sm:$0xff] }
   0x6   :  { %91 = vmatpush.msra.mxu2 %v23_v2  ;;  %92 = vmatpush.msra.mxu3 %v23_v2  ;;  %v29_v19 = vld [vmem:[%s190_s2 + $0x18] sm:$0xff] }
   0x7   :  { %53 = vmatpush.msra.mxu0 %v23_v2  ;;  %90 = vmatpush.msra.mxu1 %v23_v2 }
   0x8   :  { %94 = vmatpush.msra.mxu2 %v22_v3  ;;  %95 = vmatpush.msra.mxu3 %v22_v3 }
   0x9   :  { %54 = vmatpush.msra.mxu0 %v22_v3  ;;  %93 = vmatpush.msra.mxu1 %v22_v3 }
   0xa   :  { %97 = vmatpush.msra.mxu2 %v21_v4  ;;  %98 = vmatpush.msra.mxu3 %v21_v4 }
   0xb   :  { %55 = vmatpush.msra.mxu0 %v21_v4  ;;  %96 = vmatpush.msra.mxu1 %v21_v4 }
   0xc   :  { %100 = vmatpush.msra.mxu2 %v20_v5  ;;  %101 = vmatpush.msra.mxu3 %v20_v5 }
   0xd   :  { %56 = vmatpush.msra.mxu0 %v20_v5  ;;  %99 = vmatpush.msra.mxu1 %v20_v5 }
   0xe   :  { %103 = vmatpush.msra.mxu2 %v19_v6  ;;  %104 = vmatpush.msra.mxu3 %v19_v6 }
   0xf   :  { %57 = vmatpush.msra.mxu0 %v19_v6  ;;  %102 = vmatpush.msra.mxu1 %v19_v6 }
  0x10   :  { %106 = vmatpush.msra.mxu2 %v18_v7  ;;  %107 = vmatpush.msra.mxu3 %v18_v7 }
  0x11   :  { %82 = vmatmul.msk.f32.vlgmr.msra.gmra.mxu2 %vm30_vm0, %v16_v8  ;;  %83 = vmatmul.msk.f32.vlgmr.msra.gmra.mxu3 %vm30_vm0, %v17_v9 }
  0x12   :  { %58 = vmatpush.msra.mxu0 %v18_v7  ;;  %105 = vmatpush.msra.mxu1 %v18_v7 }
  0x13   :  { %80 = vmatmul.msk.f32.vlgmr.msra.gmra.mxu0 %vm30_vm0, %v14_v10  ;;  %81 = vmatmul.msk.f32.vlgmr.msra.gmra.mxu1 %vm30_vm0, %v15_v11 }
  0x90   :  { %v60_v14 = vpop.f32.mrf.mxu0  ;;  %v63_v15 = vpop.f32.mrf.mxu1 }
  0x91   :  { %v61_v16 = vadd.f32 %v60_v14, %v26_v12  ;;  %v64_v17 = vadd.f32 %v63_v15, %v27_v13 }
  0x93   :  { %72 = vst [vmem:[%s191_s3] sm:$0xff] %v61_v16 }
  0x94   :  { %73 = vst [vmem:[%s191_s3 + $0x8] sm:$0xff] %v64_v17  ;;  %v66_v20 = vpop.f32.mrf.mxu2  ;;  %v69_v21 = vpop.f32.mrf.mxu3 }
  0x95   :  { %v67_v22 = vadd.f32 %v66_v20, %v28_v18  ;;  %v70_v23 = vadd.f32 %v69_v21, %v29_v19 }
  0x97   :  { %74 = vst [vmem:[%s191_s3 + $0x10] sm:$0xff] %v67_v22 }
  0x98   :  { %75 = vst [vmem:[%s191_s3 + $0x18] sm:$0xff] %v70_v23 }

</bundles_post_ra>
